<compile_context>
chip_gen: v6e
topology: v6e:2x2x1
jax: 0.10.0
libtpu: 0.0.40
codegen_flags: <defaults>
</compile_context>

<pallas_src>
import functools

import jax
import jax.numpy as jnp
from jax.experimental import pallas as pl
from jax.experimental.pallas import tpu as pltpu


_TARGET_TILE_BYTES = 2 * 1024 * 1024  # ~2 MiB/input tile (double-buffered -> ~4 MiB)


def _aligned_divisor(dim, align, cap):
    """Largest divisor t of `dim` with t % align == 0 and t <= cap.

    Returns None if `dim` is not a multiple of `align` (then only the full
    dim is a legal Pallas block size along that axis).
    """
    if dim % align != 0:
        return None
    best = None
    t = align
    limit = min(dim, max(align, cap))
    while t <= limit:
        if dim % t == 0:
            best = t
        t += align
    return best


def _gap_single_pass_kernel(x_ref, o_ref, *, inv_hw):
    # x_ref: (row_tile, H*W) block; whole reduction in one shot.
    x = x_ref[...].astype(jnp.float32)
    o_ref[...] = (jnp.sum(x, axis=-1, keepdims=True) * inv_hw).astype(o_ref.dtype)


def _gap_tiled_kernel(x_ref, o_ref, acc_ref, *, inv_hw):
    # x_ref:   (row_tile, hw_tile) block of the flattened (N*C, H*W) input
    # o_ref:   (row_tile, 1) output block (revisited across the k axis)
    # acc_ref: (row_tile, 1) float32 VMEM accumulator scratch
    k = pl.program_id(1)

    @pl.when(k == 0)
    def _():
        acc_ref[...] = jnp.zeros_like(acc_ref)

    # f32 accumulate; the cross-lane reduce runs on the XLU slot and hides
    # under the input DMA (kernel is HBM-bandwidth bound).
    x = x_ref[...].astype(jnp.float32)
    acc_ref[...] += jnp.sum(x, axis=-1, keepdims=True)

    @pl.when(k == pl.num_programs(1) - 1)
    def _():
        o_ref[...] = (acc_ref[...] * inv_hw).astype(o_ref.dtype)


def global_avg_pool2d(x, *, target_tile_bytes=_TARGET_TILE_BYTES):
    """Equivalent of F.avg_pool2d(x, kernel_size=x.size()[2:]) for NCHW input."""
    N, C, H, W = x.shape
    NC, HW = N * C, H * W
    itemsize = jnp.dtype(x.dtype).itemsize
    inv_hw = 1.0 / float(HW)

    # ---- tile selection (byte-budget driven, (8,128)-aligned) --------------
    # 1) Prefer keeping the whole reduction axis in one block; size the row
    #    tile (multiple of 8 sublanes) to the byte budget.
    row_cap = max(8, target_tile_bytes // max(1, HW * itemsize))
    row_tile = _aligned_divisor(NC, 8, row_cap) or NC
    hw_tile = HW

    # 2) If one (row_tile, HW) slab still blows the budget, also tile the
    #    reduction axis (multiples of 128 lanes); the accumulator keeps this
    #    bit-exact w.r.t. a single-pass f32 sum.
    if row_tile * hw_tile * itemsize > 2 * target_tile_bytes:
        hw_cap = max(128, target_tile_bytes // max(1, 8 * itemsize))
        ht = _aligned_divisor(HW, 128, hw_cap)
        if ht is not None:
            hw_tile = ht
            row_cap = max(8, target_tile_bytes // max(1, hw_tile * itemsize))
            row_tile = _aligned_divisor(NC, 8, row_cap) or NC

    xr = x.reshape(NC, HW)  # free layout view of contiguous NCHW
    out_shape = jax.ShapeDtypeStruct((NC, 1), x.dtype)
    cost = pl.CostEstimate(
        flops=NC * HW,
        transcendentals=0,
        bytes_accessed=NC * HW * itemsize + NC * itemsize,
    )

    if hw_tile == HW:
        # Single-pass: 1-D, fully parallel grid; no scratch, no pl.when.
        out = pl.pallas_call(
            functools.partial(_gap_single_pass_kernel, inv_hw=inv_hw),
            out_shape=out_shape,
            grid_spec=pltpu.PrefetchScalarGridSpec(
                num_scalar_prefetch=0,
                grid=(NC // row_tile,),
                in_specs=[pl.BlockSpec((row_tile, HW), lambda i: (i, 0))],
                out_specs=pl.BlockSpec((row_tile, 1), lambda i: (i, 0)),
            ),
            compiler_params=pltpu.CompilerParams(
                dimension_semantics=("parallel",),
            ),
            cost_estimate=cost,
        )(xr)
    else:
        # Tiled reduction: row axis parallel, reduction axis last + arbitrary.
        out = pl.pallas_call(
            functools.partial(_gap_tiled_kernel, inv_hw=inv_hw),
            out_shape=out_shape,
            grid_spec=pltpu.PrefetchScalarGridSpec(
                num_scalar_prefetch=0,
                grid=(NC // row_tile, HW // hw_tile),
                in_specs=[pl.BlockSpec((row_tile, hw_tile), lambda i, k: (i, k))],
                out_specs=pl.BlockSpec((row_tile, 1), lambda i, k: (i, 0)),
                scratch_shapes=[pltpu.VMEM((row_tile, 1), jnp.float32)],
            ),
            compiler_params=pltpu.CompilerParams(
                dimension_semantics=("parallel", "arbitrary"),
            ),
            cost_estimate=cost,
        )(xr)

    # TODO(synk): if an upstream layer can hand over NHWC, a (N, H*W, C)
    # variant with C on lanes avoids lane masking when H*W % 128 != 0.
    return out.reshape(N, C, 1, 1)


if __name__ == "__main__":
    key = jax.random.PRNGKey(0)

    # Primary check: small NCHW f32 input (matches the PyTorch module spec).
    # Exercises the single-pass (fully parallel) specialization.
    x = jax.random.normal(key, (2, 4, 16, 16), dtype=jnp.float32)
    y = global_avg_pool2d(x)
    jax.block_until_ready(y)

    y_ref = jnp.mean(x, axis=(2, 3), keepdims=True)
    assert y.shape == (2, 4, 1, 1), y.shape
    assert jnp.allclose(y, y_ref, atol=1e-5, rtol=1e-5), "mismatch vs reference"

    # Secondary check: bf16 input with a tiny tile budget to force both the
    # multi-row-block ("parallel") axis and the tiled-reduction ("arbitrary")
    # axis + f32 accumulator path.
    k2 = jax.random.PRNGKey(0)
    x2 = jax.random.normal(k2, (1, 16, 32, 64), dtype=jnp.bfloat16)
    y2 = global_avg_pool2d(x2, target_tile_bytes=8192)
    jax.block_until_ready(y2)

    y2_ref = jnp.mean(x2.astype(jnp.float32), axis=(2, 3), keepdims=True)
    assert y2.shape == (1, 16, 1, 1), y2.shape
    assert jnp.allclose(y2.astype(jnp.float32), y2_ref, atol=1e-2, rtol=1e-2), \
        "bf16 tiled-reduction mismatch vs reference"

    print("KERNEL_OK")
</pallas_src>

<mosaic_0001>
module attributes {stable_mosaic.version = 11 : i64} {
  func.func @_gap_single_pass_kernel(%arg0: i32, %arg1: memref<8x256xf32, #tpu.memory_space<vmem>>, %arg2: memref<8x1xf32, #tpu.memory_space<vmem>>) attributes {dimension_semantics = [#tpu.dimension_semantics<parallel>], iteration_bounds = array<i64: 1>, scalar_prefetch = 0 : i64, scratch_operands = 0 : i64, tpu.core_type = #tpu.core_type<tc>, window_params = [{transform_indices = @transform_0, window_bounds = array<i64: 8, 256>}, {transform_indices = @transform_1, window_bounds = array<i64: 8, 1>}]} {
    %c0 = arith.constant 0 : index
    %c0_0 = arith.constant 0 : index
    %0 = vector.load %arg1[%c0, %c0_0] : memref<8x256xf32, #tpu.memory_space<vmem>>, vector<8x256xf32>
    %cst = arith.constant dense<0.000000e+00> : vector<8xf32>
    %1 = vector.multi_reduction <add>, %0, %cst [1] : vector<8x256xf32> to vector<8xf32>
    %2 = vector.shape_cast %1 : vector<8xf32> to vector<8x1xf32>
    %cst_1 = arith.constant 3.906250e-03 : f32
    %3 = vector.broadcast %cst_1 : f32 to vector<8x1xf32>
    %4 = arith.mulf %2, %3 : vector<8x1xf32>
    %c0_2 = arith.constant 0 : index
    %c0_3 = arith.constant 0 : index
    %5 = vector.load %arg2[%c0_2, %c0_3] : memref<8x1xf32, #tpu.memory_space<vmem>>, vector<8x1xf32>
    tpu.vector_store %arg2[%c0_2, %c0_3], %4 {strides = array<i32>} : memref<8x1xf32, #tpu.memory_space<vmem>>, vector<8x1xf32>,
    return
  }
  func.func @transform_0(%arg0: i32) -> (i32, i32) {
    %c0_i32 = arith.constant 0 : i32
    %c0_i32_0 = arith.constant 0 : i32
    return %arg0, %c0_i32 : i32, i32
  }
  func.func @transform_1(%arg0: i32) -> (i32, i32) {
    %c0_i32 = arith.constant 0 : i32
    %c0_i32_0 = arith.constant 0 : i32
    return %arg0, %c0_i32 : i32, i32
  }
}

</mosaic_0001>

<bundles_post_ra>
// kernel: tpu_custom_call.1
= control target key start
LH: loop header
LB: loop body
LE: loop exit
PB: predicated region body
PF: predicated region fallthrough
CT: control target
= control target key end

     0   :  { %6 = vsyncpa [#allocation3], 0  ;;  %s56_s6 = smov [#allocation2]   ;;  %s73_s0 = inlined_call_operand.hbm [shape: f32[8,256], index: 0, kind: input, shape index: {}]   ;;  %s74_s1 = inlined_call_operand.vmem [shape: f32[8,1], index: 1, kind: output, shape index: {}]  }
   0x1   :  { %s13_s7 = sshll.u32 %s56_s6, 4  ;;  %s14_s7 = int_to_ptr.vmem [resolvable:$true] %s13_s7 }
   0x2   :  { %s42_s8 = scalar_lea.vmem %s14_s7, 256  ;;  %p47_p1 = scmp.lt.s32.totalorder %s14_s7, %s14_s7 }
   0x3   :  { %p43_p0 = scmp.ne.s32.totalorder %s14_s7, %s42_s8  ;;  %p48_p2 = scmp.lt.s32.totalorder %s42_s8, %s42_s8 }
   0x5   :  { %p49_p3 = por %p48_p2, %p47_p1 }
   0x7   :  { %p50_p4 = pnand %p49_p3, %p43_p0 }
   0x9   :  { %53 = shalt.err (!%p50_p4)
}
   0xa   :  { %16 = dma.hbm_to_vmem [thread:$0]  %s73_s0, 256, %s14_s7, [#allocation3]  }
   0xb   :  { %54 = dma.done.wait [#allocation3], 256  }
   0xc   :  { %55 = vsyncadd [#allocation3], 4294967040  ;;  %v20_v0 = vld [vmem:[#allocation2] sm:$0xff]  ;;  %v21_v1 = vld [vmem:[#allocation2 + $0x8] sm:$0xff]  ;;  %vm26_vm0 = vcmask 7168  }
   0xd   :  { %v22_v2 = vadd.f32 %v21_v1, %v20_v0 }
   0xf   :  { %23 = vadd.xlane.f32.xlu0 %v22_v2 }
  0x98   :  { %v24_v3 = vpop.xlane.xlu0 %23 }
  0x99   :  { %v25_v4 = vmul.f32 0.00390625, %v24_v3 }
  0x9b   :  { %27 = vst.msk [vmem:[%s74_s1] sm:$0xff] %vm26_vm0, %v25_v4 }
  0x9c   :  { %32 = vsyncpa [#allocation3], 1 }

</bundles_post_ra>
